<compile_context>
chip_gen: v5e
topology: v5e:2x2
jax: 0.10.0
libtpu: 0.0.40
codegen_flags: <defaults>
</compile_context>

<pallas_src>
import jax
import jax.numpy as jnp
from jax.experimental import pallas as pl
from jax.experimental.pallas import tpu as pltpu


def _attn_pool_kernel(x_ref, w_ref, b_ref, o_ref):
    # x_ref: (bt, T, Din) VMEM   -- batch tile of inputs
    # w_ref: (1, Din)     VMEM   -- fused projection vector  W^T v
    # b_ref: (1, 1)       SMEM   -- fused scalar bias        b . v
    # o_ref: (bt, T)      VMEM   -- normalized attention weights
    x = x_ref[...]                       # (bt, T, Din)
    w = w_ref[...]                       # (1, Din) broadcasts over (bt, T, Din)
    b = b_ref[0, 0]

    # Fused matvec: reduce over Din (lane axis) -> (bt, T); keep T on lanes.
    scores = jnp.sum(x * w, axis=-1) + b
    s = jnp.tanh(scores)

    # Softmax over the sequence axis (local to this batch tile).
    m = jnp.max(s, axis=1, keepdims=True)
    e = jnp.exp(s - m)
    denom = jnp.sum(e, axis=1, keepdims=True)
    # EUP approximate reciprocal + one Newton step: off the VALU divide path,
    # yet within ~1e-7 relative error of the exact divide.
    inv = pl.reciprocal(denom, approx=True)
    inv = inv * (2.0 - denom * inv)
    o_ref[...] = (e * inv).astype(o_ref.dtype)


def _choose_batch_tile(B, T, Din, itemsize, budget_bytes=24 << 20):
    """Largest batch tile whose double-buffered x slab fits the VMEM budget
    (budget sized for v7x's 64 MiB physical VMEM; plenty for v5e/v6e too)."""
    max_bt = max(1, budget_bytes // (2 * T * Din * itemsize))
    if max_bt >= B:
        return B
    best = None
    d = 8
    while d <= min(max_bt, B):
        if B % d == 0:
            best = d
        d += 8
    # TODO(synk): batches with no multiple-of-8 divisor under budget fall back to
    # a single whole-batch block; pad B in the wrapper if that ever OOMs.
    return best if best is not None else B


def classic_attention(x, weight, bias, v):
    """x: (B, T, Din); weight: (E, Din); bias: (E,); v: (E,) -> (B, T) softmax weights."""
    B, T, Din = x.shape

    # Exact algebraic fusion of Linear + bmm(v):  tanh(x @ (W^T v) + b.v)
    w_eff = jnp.einsum("ed,e->d", weight, v).reshape(1, Din).astype(jnp.float32)
    b_eff = jnp.dot(bias, v).reshape(1, 1).astype(jnp.float32)

    itemsize = jnp.dtype(x.dtype).itemsize
    bt = _choose_batch_tile(B, T, Din, itemsize)
    grid = (B // bt,)

    tile_bytes = bt * T * Din * itemsize
    vmem_limit = int(min(64 << 20, max(16 << 20, 3 * tile_bytes)))

    cost = pl.CostEstimate(
        flops=2 * B * T * Din + 5 * B * T,
        transcendentals=2 * B * T,            # tanh + exp per score
        bytes_accessed=x.size * itemsize + B * T * 4 + Din * 4 + 4,
    )

    return pl.pallas_call(
        _attn_pool_kernel,
        out_shape=jax.ShapeDtypeStruct((B, T), jnp.float32),
        grid=grid,
        in_specs=[
            pl.BlockSpec((bt, T, Din), lambda i: (i, 0, 0)),
            pl.BlockSpec((1, Din), lambda i: (0, 0)),
            pl.BlockSpec(memory_space=pltpu.MemorySpace.SMEM),
        ],
        out_specs=pl.BlockSpec((bt, T), lambda i: (i, 0)),
        compiler_params=pltpu.CompilerParams(
            dimension_semantics=("parallel",),
            vmem_limit_bytes=vmem_limit,
        ),
        cost_estimate=cost,
    )(x, w_eff, b_eff)


def _reference(x, weight, bias, v):
    lin = jnp.einsum("btd,ed->bte", x, weight) + bias
    s = jnp.tanh(jnp.einsum("bte,e->bt", lin, v))
    return jax.nn.softmax(s, axis=1)


if __name__ == "__main__":
    # Small shapes consistent with the module: batch=2, seq=8, input_dim=32, embed_dim=16
    B, T, INPUT_DIM, EMBED_DIM = 2, 8, 32, 16

    key = jax.random.PRNGKey(0)
    k_x, k_w, k_b, k_v = jax.random.split(key, 4)

    x = jax.random.normal(k_x, (B, T, INPUT_DIM), dtype=jnp.float32)
    weight = jax.random.normal(k_w, (EMBED_DIM, INPUT_DIM), dtype=jnp.float32) * 0.1
    bias = jax.random.normal(k_b, (EMBED_DIM,), dtype=jnp.float32) * 0.1
    v = jax.random.normal(k_v, (EMBED_DIM,), dtype=jnp.float32)

    out = jax.block_until_ready(classic_attention(x, weight, bias, v))
    ref = _reference(x, weight, bias, v)

    assert out.shape == (B, T)
    assert jnp.allclose(out, ref, atol=1e-5, rtol=1e-5), "mismatch vs reference"
    # TODO(synk): attn_dropout is defined in the module __init__ but never applied in forward; omitted.

    print("KERNEL_OK")
</pallas_src>

<mosaic_0001>
module attributes {stable_mosaic.version = 11 : i64} {
  func.func @_attn_pool_kernel(%arg0: i32, %arg1: memref<2x8x32xf32, #tpu.memory_space<vmem>>, %arg2: memref<1x32xf32, #tpu.memory_space<vmem>>, %arg3: memref<1x1xf32, #tpu.memory_space<smem>>, %arg4: memref<2x8xf32, #tpu.memory_space<vmem>>) attributes {dimension_semantics = [#tpu.dimension_semantics<parallel>], iteration_bounds = array<i64: 1>, scalar_prefetch = 0 : i64, scratch_operands = 0 : i64, tpu.core_type = #tpu.core_type<tc>, window_params = [{transform_indices = @transform_0, window_bounds = array<i64: 2, 8, 32>}, {pipeline_mode = #tpu.pipeline_mode<synchronous>, transform_indices = @transform_1, window_bounds = array<i64: 1, 32>}, {transform_indices = @transform_2, window_bounds = array<i64: 1, 1>}, {transform_indices = @transform_3, window_bounds = array<i64: 2, 8>}]} {
    %c0 = arith.constant 0 : index
    %c0_0 = arith.constant 0 : index
    %c0_1 = arith.constant 0 : index
    %0 = vector.load %arg1[%c0, %c0_0, %c0_1] : memref<2x8x32xf32, #tpu.memory_space<vmem>>, vector<2x8x32xf32>
    %c0_2 = arith.constant 0 : index
    %c0_3 = arith.constant 0 : index
    %1 = vector.load %arg2[%c0_2, %c0_3] : memref<1x32xf32, #tpu.memory_space<vmem>>, vector<1x32xf32>
    %c0_4 = arith.constant 0 : index
    %c0_5 = arith.constant 0 : index
    %2 = memref.load %arg3[%c0_4, %c0_5] : memref<1x1xf32, #tpu.memory_space<smem>>
    %3 = vector.shape_cast %1 : vector<1x32xf32> to vector<1x1x32xf32>
    %4 = vector.broadcast %3 : vector<1x1x32xf32> to vector<2x8x32xf32>
    %5 = arith.mulf %0, %4 : vector<2x8x32xf32>
    %cst = arith.constant dense<0.000000e+00> : vector<2x8xf32>
    %6 = vector.multi_reduction <add>, %5, %cst [2] : vector<2x8x32xf32> to vector<2x8xf32>
    %7 = vector.broadcast %2 : f32 to vector<2x8xf32>
    %8 = arith.addf %6, %7 : vector<2x8xf32>
    %9 = math.tanh %8 : vector<2x8xf32>
    %cst_6 = arith.constant dense<0xFF800000> : vector<2xf32>
    %10 = vector.multi_reduction <maximumf>, %9, %cst_6 [1] : vector<2x8xf32> to vector<2xf32>
    %11 = vector.shape_cast %10 : vector<2xf32> to vector<2x1xf32>
    %12 = vector.broadcast %11 : vector<2x1xf32> to vector<2x8xf32>
    %13 = arith.subf %9, %12 : vector<2x8xf32>
    %14 = math.exp %13 : vector<2x8xf32>
    %cst_7 = arith.constant dense<0.000000e+00> : vector<2xf32>
    %15 = vector.multi_reduction <add>, %14, %cst_7 [1] : vector<2x8xf32> to vector<2xf32>
    %16 = vector.shape_cast %15 : vector<2xf32> to vector<2x1xf32>
    %17 = tpu.reciprocal %16 {approx = true} : vector<2x1xf32> -> vector<2x1xf32>
    %18 = arith.mulf %16, %17 : vector<2x1xf32>
    %cst_8 = arith.constant 2.000000e+00 : f32
    %19 = vector.broadcast %cst_8 : f32 to vector<2x1xf32>
    %20 = arith.subf %19, %18 : vector<2x1xf32>
    %21 = arith.mulf %17, %20 : vector<2x1xf32>
    %22 = vector.broadcast %21 : vector<2x1xf32> to vector<2x8xf32>
    %23 = arith.mulf %14, %22 : vector<2x8xf32>
    %c0_9 = arith.constant 0 : index
    %c0_10 = arith.constant 0 : index
    %24 = vector.load %arg4[%c0_9, %c0_10] : memref<2x8xf32, #tpu.memory_space<vmem>>, vector<2x8xf32>
    tpu.vector_store %arg4[%c0_9, %c0_10], %23 {strides = array<i32>} : memref<2x8xf32, #tpu.memory_space<vmem>>, vector<2x8xf32>,
    return
  }
  func.func @transform_0(%arg0: i32) -> (i32, i32, i32) {
    %c0_i32 = arith.constant 0 : i32
    %c0_i32_0 = arith.constant 0 : i32
    %c0_i32_1 = arith.constant 0 : i32
    return %arg0, %c0_i32, %c0_i32_0 : i32, i32, i32
  }
  func.func @transform_1(%arg0: i32) -> (i32, i32) {
    %c0_i32 = arith.constant 0 : i32
    %c0_i32_0 = arith.constant 0 : i32
    %c0_i32_1 = arith.constant 0 : i32
    return %c0_i32, %c0_i32_0 : i32, i32
  }
  func.func @transform_2(%arg0: i32) -> (i32, i32) {
    %c0_i32 = arith.constant 0 : i32
    %c0_i32_0 = arith.constant 0 : i32
    %c0_i32_1 = arith.constant 0 : i32
    return %c0_i32, %c0_i32_0 : i32, i32
  }
  func.func @transform_3(%arg0: i32) -> (i32, i32) {
    %c0_i32 = arith.constant 0 : i32
    %c0_i32_0 = arith.constant 0 : i32
    return %arg0, %c0_i32 : i32, i32
  }
}

</mosaic_0001>

<bundles_post_ra>
// kernel: tpu_custom_call.1
= control target key start
LH: loop header
LB: loop body
LE: loop exit
PB: predicated region body
PF: predicated region fallthrough
CT: control target
= control target key end

     0   :  { %9 = vsyncpa [#allocation4], 0  ;;  %s247_s0 = inlined_call_operand.hbm [shape: f32[2,8,32], index: 0, kind: input, shape index: {}]   ;;  %s248_s1 = inlined_call_operand.vmem [shape: f32[1,32], index: 1, kind: input, shape index: {}]   ;;  %s249_s2 = inlined_call_operand.<no memory space> [shape: f32[1,1], index: 2, kind: input, shape index: {}]   ;;  %s250_s3 = inlined_call_operand.hbm [shape: f32[2,8], index: 3, kind: output, shape index: {}]  }
   0x1   :  { %10 = vsyncpa [#allocation5], 0  ;;  %s15_s14 = sshll.u32 %s247_s0, 4  ;;  %s204_s15 = smov [#allocation3]   ;;  %s16_s14 = int_to_ptr.hbm [resolvable:$true] %s15_s14 }
   0x2   :  { %s17_s16 = sshll.u32 %s204_s15, 4  ;;  %s205_s17 = smov 128   ;;  %s18_s16 = int_to_ptr.vmem [resolvable:$true] %s17_s16 }
   0x3   :  { %s206_s18 = smov 8  }
   0x4   :  { %23 = dma.hbm_to_vmem [thread:$0]  %s16_s14, 256, %s18_s16, [#allocation4], %s205_s17, %s205_s17, %s206_s18  }
   0x5   :  { %200 = dma.done.wait [#allocation4], 256  }
   0x6   :  { %201 = vsyncadd [#allocation4], 4294967040  ;;  %v32_v0 = vld [vmem:[#allocation3] sm:$0xff]  ;;  %vm41_vm0 = vcmask 261120   ;;  %v33_v3 = vld [vmem:[#allocation3 + $0x8] sm:$0xff]  ;;  %v48_v8 = vstv %s249_s2  ;;  %v55_v12 = vlaneseq  ;;  %vm59_vm1 = vcmask 1041409  }
   0x7   :  { %v141_v1 = vld [vmem:[%s248_s1] ss:$0 sm:$0xff]  ;;  %vm62_vm2 = vcmask 58368   ;;  %v207_v20 = vmov 0   ;;  %s208_s1 = smov [#allocation6]   ;;  %s123_s24 = sshll.u32 %s250_s3, 4  ;;  %s124_s24 = int_to_ptr.hbm [resolvable:$true] %s123_s24 }
   0x8   :  { %v39_v2 = vmul.f32 %v141_v1, %v32_v0  ;;  %v40_v5 = vmul.f32 %v141_v1, %v33_v3  ;;  %v56_v13 = vand.u32 127, %v55_v12  ;;  %139 = vset.pattern.permute.xlu2 %v207_v20  ;;  %138 = vset.pattern.permute.xlu1 %v207_v20  ;;  %s121_s2 = sshll.u32 %s208_s1, 4  ;;  %s122_s2 = int_to_ptr.vmem [resolvable:$true] %s121_s2 }
   0x9   :  { %140 = vset.pattern.permute.xlu0 %v207_v20 }
   0xa   :  { %v42_v4 = vsel %vm41_vm0, %v39_v2, 0.0  ;;  %v45_v6 = vsel %vm41_vm0, %v40_v5, 0.0 }
   0xb   :  { %43 = vadd.xlane.f32.xlu0 %v42_v4 }
  0x13   :  { %46 = vadd.xlane.f32.xlu0 %v45_v6 }
  0x7e   :  { %v44_v7 = vpop.xlane.xlu0 %43 }
  0x7f   :  { %v49_v9 = vadd.f32 %v48_v8, %v44_v7 }
  0x81   :  { %142 = vtanh.f32 %v49_v9 }
  0x86   :  { %v47_v10 = vpop.xlane.xlu0 %46 }
  0x87   :  { %v50_v11 = vadd.f32 %v48_v8, %v47_v10  ;;  %v143_v14 = vpop.eup %142 }
  0x88   :  { %v57_v16 = vperm.slane %v143_v14, %v56_v13 }
  0x89   :  { %144 = vtanh.f32 %v50_v11 }
  0x8f   :  { %v145_v15 = vpop.eup %144 }
  0x90   :  { %v58_v17 = vperm.slane %v145_v15, %v56_v13 }
  0x92   :  { %v60_v18 = vsel %vm59_vm1, %v58_v17, %v57_v16 }
  0x93   :  { %v63_v19 = vsel %vm62_vm2, %v60_v18, -inf }
  0x94   :  { %64 = vmax.xlane.f32.xlu1 %v63_v19 }
 0x107   :  { %v65_v21 = vpop.xlane.xlu1 %64 }
 0x108   :  { %v67_v22 = vperm.slane %v65_v21, 0  ;;  %v68_v23 = vperm.slane %v65_v21, 1 }
 0x10a   :  { %v71_v24 = vsub.f32 %v143_v14, %v67_v22  ;;  %v72_v25 = vsub.f32 %v145_v15, %v68_v23 }
 0x10c   :  { %v73_v26 = vmul.f32 1.442695, %v71_v24  ;;  %v75_v27 = vmul.f32 1.442695, %v72_v25 }
 0x10e   :  { %146 = vpow2.f32 %v73_v26 }
 0x10f   :  { %148 = vpow2.f32 %v75_v27 }
 0x114   :  { %v147_v28 = vpop.eup %146 }
 0x115   :  { %v149_v29 = vpop.eup %148  ;;  %80 = vperm.xlu1 %138, %v147_v28  }
 0x116   :  { %83 = vperm.xlu2 %139, %v149_v29  }
 0x170   :  { %v84_v30 = vpop.permute.xlu2 %83 }
 0x171   :  { %v86_v32 = vperm.slane %v84_v30, %v56_v13 }
 0x187   :  { %v81_v31 = vpop.permute.xlu1 %80 }
 0x188   :  { %v85_v33 = vperm.slane %v81_v31, %v56_v13 }
 0x18a   :  { %v87_v34 = vsel %vm59_vm1, %v86_v32, %v85_v33 }
 0x18b   :  { %v89_v35 = vsel %vm62_vm2, %v87_v34, 0.0 }
 0x18c   :  { %90 = vadd.xlane.f32.xlu2 %v89_v35 }
 0x1ff   :  { %v91_v36 = vpop.xlane.xlu2 %90 }
 0x200   :  { %150 = vrcp.f32 %v91_v36 }
 0x206   :  { %v151_v37 = vpop.eup %150 }
 0x207   :  { %v93_v38 = vmul.f32 %v151_v37, %v91_v36 }
 0x209   :  { %v94_v39 = vsub.f32 2.0, %v93_v38 }
 0x20b   :  { %v95_v40 = vmul.f32 %v151_v37, %v94_v39 }
 0x20d   :  { %v97_v41 = vperm.slane %v95_v40, 0  ;;  %v98_v42 = vperm.slane %v95_v40, 1 }
 0x20f   :  { %v102_v43 = vmul.f32 %v149_v29, %v98_v42  ;;  %v101_v44 = vmul.f32 %v147_v28, %v97_v41 }
 0x211   :  { %109 = vperm.xlu1 %138, %v102_v43   ;;  %106 = vperm.xlu0 %140, %v101_v44  }
 0x283   :  { %v110_v45 = vpop.permute.xlu1 %109  ;;  %v107_v46 = vpop.permute.xlu0 %106 }
 0x284   :  { %v112_v47 = vperm.slane %v110_v45, %v56_v13  ;;  %v111_v48 = vperm.slane %v107_v46, %v56_v13 }
 0x286   :  { %v113_v49 = vsel %vm59_vm1, %v112_v47, %v111_v48 }
 0x287   :  { %115 = vst.msk [vmem:[#allocation6] sm:$0x3] %vm62_vm2, %v113_v49 }
 0x288   :  { %126 = dma.vmem_to_hbm [thread:$0]  %s122_s2, 32, %s124_s24, [#allocation5]  }
 0x289   :  { %202 = dma.done.wait [#allocation5], 32  }
 0x28a   :  { %203 = vsyncadd [#allocation5], 4294967264 }
 0x28b   :  { %131 = vsyncpa [#allocation4], 1 }
 0x28c   :  { %132 = vsyncpa [#allocation5], 1 }

</bundles_post_ra>
